<compile_context>
chip_gen: v7x
topology: tpu7x:2x2x1
jax: 0.10.0
libtpu: 0.0.40
codegen_flags: <defaults>
</compile_context>

<pallas_src>
import math

import jax
import jax.numpy as jnp
import numpy as np
from jax.experimental import pallas as pl
from jax.experimental.pallas import tpu as pltpu


def _dot(a, b):
    # HIGHEST precision so the f32 path stays f32-accurate on the MXU; bf16
    # operands are unaffected (exact bf16 products, f32 accumulation).
    return jnp.dot(a, b, precision=jax.lax.Precision.HIGHEST,
                   preferred_element_type=jnp.float32)


def _make_coord_attn_kernel(H, W):
    def kernel(x_ref, p_ref, eh_ref, ew_ref,
               w1_ref, sh_ref, wh_ref, bh_ref, ww_ref, bw_ref, out_ref):
        # x block: (nb*C, H*W) in the I/O dtype; lanes = H*W (lane-dense).
        x = x_ref[...]

        # Adaptive avg pools for ALL rows as one MXU matmul against the constant
        # pooling matrix (cols [0,H) = mean over w, cols [H,H+W) = mean over h).
        pooled = _dot(x, p_ref[...])                              # (nb*C, H+W) f32

        # conv1 + folded conv1-bias/eval-BN (block-diagonal over the nb images)
        # + SiLU.  Shift added as a lane-broadcast on the small output.
        y = _dot(w1_ref[...], pooled) + sh_ref[...]               # (nb*mid, H+W)
        y = y * jax.nn.sigmoid(y)                                 # SiLU (EUP)

        yh = y[:, :H]                                             # (nb*mid, H)
        yw = y[:, H:H + W]                                        # (nb*mid, W)

        # conv_h / conv_w (block-diagonal) + bias + sigmoid gates.
        ah = jax.nn.sigmoid(_dot(wh_ref[...], yh) + bh_ref[...])  # (nb*C, H)
        aw = jax.nn.sigmoid(_dot(ww_ref[...], yw) + bw_ref[...])  # (nb*C, W)

        # Expand the gates straight into the lane-dense (nb*C, H*W) layout via
        # two constant 0/1 expansion matmuls (idle MXU, no relayout copies).
        gh = _dot(ah, eh_ref[...])                                # (nb*C, HW)
        gw = _dot(aw, ew_ref[...])                                # (nb*C, HW)
        gate = gh * gw

        # Final gating in the I/O dtype: no full-size f32 copy of x; the gate is
        # down-cast once (bf16 VALU on v6e/v7x; the f32 path is unchanged).
        out_ref[...] = (x * gate.astype(x.dtype)).astype(out_ref.dtype)

    return kernel


def _vmem_capacity_bytes():
    try:
        return int(pltpu.get_tpu_info().vmem_capacity_bytes)
    except Exception:
        return 64 << 20          # conservative fallback (v7x-sized per-core VMEM)


def _pick_nb(N, C, per_image_bytes, vmem_cap, target_steps=4):
    """Images per grid step: VMEM-budgeted, >= target_steps grid steps when N
    allows, and block rows (nb*C) kept a multiple of the 8-row sublane pack."""
    budget = max(1 << 20, vmem_cap // 32)        # ~2 MiB on 64 MiB parts, ~4 MiB on 128 MiB parts
    nb_budget = max(1, budget // max(1, per_image_bytes))
    nb_steps = max(1, pl.cdiv(N, target_steps))  # keep >= target_steps steps for pipelining/megacore
    nb_sublane = pl.cdiv(8, C)                   # keep block rows sublane-dense
    nb = max(1, min(N, nb_budget, max(nb_steps, nb_sublane)))
    if (nb * C) % 8 != 0 and nb * C != N * C:    # sublane-align block rows if we can
        nb = min(N, nb * (8 // math.gcd(nb * C, 8)))
    if (nb * C) % 8 != 0 and nb * C != N * C:    # fall back: block rows == full array rows
        nb = N
    return nb


def coord_attention(x, params, eps=1e-5, io_dtype=None):
    """Pallas CoordAttention forward.  x: (N, C, H, W) -> (N, C, H, W)."""
    N, C, H, W = x.shape
    HW, L = H * W, H + W

    # Fold conv1 bias + eval-mode BatchNorm into the conv1 weight (row scale)
    # and a per-row shift.  TODO(synk): training-mode BN (batch stats) not modeled.
    inv_std = 1.0 / jnp.sqrt(params["rvar"].astype(jnp.float32) + eps)
    scale = params["gamma"].astype(jnp.float32) * inv_std
    shift = params["beta"].astype(jnp.float32) + (
        params["b1"].astype(jnp.float32) - params["rmean"].astype(jnp.float32)) * scale
    w1s = params["w1"].astype(jnp.float32) * scale[:, None]

    if io_dtype is not None:
        x = x.astype(io_dtype)   # bf16 I/O halves HBM traffic; accumulations stay f32
    out_dtype = x.dtype
    itemsize = jnp.dtype(out_dtype).itemsize

    vmem_cap = _vmem_capacity_bytes()
    nb = _pick_nb(N, C, C * HW * itemsize, vmem_cap)
    steps = pl.cdiv(N, nb)
    Np = steps * nb
    R = nb * C                   # block rows

    # Lane-dense 2D slab: spatial on lanes (128-aligned here), image*channel rows
    # on sublanes (so C < 8 does not waste sublanes).
    # TODO(synk): for small / non-128-aligned H*W (7x7, 14x14 stages) switch to a
    # channels-last (N, H*W, C-padded) layout to avoid masked lane stores.
    # TODO(synk): for very large single images, add a second grid axis over
    # channel chunks instead of whole-image blocks.
    x_rows = x.reshape(N * C, HW)
    if Np != N:                  # ragged N: pad with whole zero images (safe end-to-end)
        x_rows = jnp.pad(x_rows, ((0, (Np - N) * C), (0, 0)))

    # Constant pooling / gate-expansion matrices (host-built, grid-invariant).
    s = np.arange(HW)
    P = np.zeros((HW, L), np.float32)
    P[s, s // W] = 1.0 / W               # mean over w  -> x_h columns [0, H)
    P[s, H + (s % W)] = 1.0 / H          # mean over h  -> x_w columns [H, H+W)
    Eh = np.zeros((H, HW), np.float32); Eh[s // W, s] = 1.0
    Ew = np.zeros((W, HW), np.float32); Ew[s % W, s] = 1.0
    P = jnp.asarray(P).astype(out_dtype)  # same dtype as x -> homogeneous MXU inputs
    Eh = jnp.asarray(Eh)
    Ew = jnp.asarray(Ew)

    # Block-diagonal per-image weights (identical weights per image) so all nb
    # images in a block share one matmul each; biases as (rows, 1) broadcast adds.
    eye = jnp.eye(nb, dtype=jnp.float32)
    w1_bd = jnp.kron(eye, w1s)                                        # (nb*mid, nb*C)
    sh_bd = jnp.tile(shift, nb)[:, None]                              # (nb*mid, 1)
    wh_bd = jnp.kron(eye, params["wh"].astype(jnp.float32))           # (nb*C, nb*mid)
    bh_bd = jnp.tile(params["bh"].astype(jnp.float32), nb)[:, None]   # (nb*C, 1)
    ww_bd = jnp.kron(eye, params["ww"].astype(jnp.float32))           # (nb*C, nb*mid)
    bw_bd = jnp.tile(params["bw"].astype(jnp.float32), nb)[:, None]   # (nb*C, 1)

    consts = (P, Eh, Ew, w1_bd, sh_bd, wh_bd, bh_bd, ww_bd, bw_bd)

    # VMEM: 2x(in+out) double-buffered I/O blocks, full-size f32 gate temporaries,
    # constants (double-buffered by the pipeline), headroom; clamp to 85% physical.
    io_block = R * HW * itemsize
    f32_block = R * HW * 4
    const_bytes = sum(int(np.prod(a.shape)) * jnp.dtype(a.dtype).itemsize for a in consts)
    need = 4 * io_block + 5 * f32_block + 2 * const_bytes + (2 << 20)
    vmem_limit = int(min(max(need, 16 << 20), int(0.85 * vmem_cap)))

    # TODO(synk): pipeline_mode=pl.Buffered(1) on these grid-invariant inputs
    # would save one VMEM buffer each at large C.
    def _const_spec(a):
        return pl.BlockSpec(a.shape, lambda n: (0, 0))

    slab = pl.BlockSpec((R, HW), lambda n: (n, 0))
    kernel = _make_coord_attn_kernel(H, W)

    out_rows = pl.pallas_call(
        kernel,
        out_shape=jax.ShapeDtypeStruct((Np * C, HW), out_dtype),
        grid=(steps,),
        in_specs=[slab] + [_const_spec(a) for a in consts],
        out_specs=slab,
        compiler_params=pltpu.CompilerParams(
            dimension_semantics=("parallel",),
            vmem_limit_bytes=vmem_limit,
        ),
    )(x_rows, *consts)

    return out_rows[:N * C].reshape(N, C, H, W)


def reference(x, params, eps=1e-5):
    """Pure-JAX reference mirroring the PyTorch CoordAttention forward exactly."""
    N, C, H, W = x.shape
    xh = jnp.mean(x, axis=3, keepdims=True)                      # (N,C,H,1)
    xw = jnp.mean(x, axis=2, keepdims=True)                      # (N,C,1,W)
    cat = jnp.concatenate([jnp.swapaxes(xh, 2, 3), xw], axis=3)  # (N,C,1,H+W)
    y = jnp.einsum('mc,nchw->nmhw', params["w1"], cat) + params["b1"][None, :, None, None]
    y = ((y - params["rmean"][None, :, None, None])
         / jnp.sqrt(params["rvar"][None, :, None, None] + eps)
         * params["gamma"][None, :, None, None]
         + params["beta"][None, :, None, None])
    y = y * jax.nn.sigmoid(y)                                    # SiLU
    yh, yw = y[..., :H], y[..., H:]
    yh = jnp.swapaxes(yh, 2, 3)                                  # (N,mid,H,1)
    ah = jax.nn.sigmoid(jnp.einsum('cm,nmhw->nchw', params["wh"], yh)
                        + params["bh"][None, :, None, None])
    aw = jax.nn.sigmoid(jnp.einsum('cm,nmhw->nchw', params["ww"], yw)
                        + params["bw"][None, :, None, None])
    return x * ah * aw


if __name__ == "__main__":
    N, C, H, W = 2, 4, 16, 16
    reduction = 32
    mid = max(8, C // reduction)   # == 8, matches CoordAttention mid_channels

    key = jax.random.PRNGKey(0)
    ks = jax.random.split(key, 11)
    params = {
        "w1":    jax.random.normal(ks[0], (mid, C), jnp.float32) * 0.5,
        "b1":    jax.random.normal(ks[1], (mid,), jnp.float32) * 0.1,
        "gamma": 1.0 + 0.1 * jax.random.normal(ks[2], (mid,), jnp.float32),
        "beta":  0.1 * jax.random.normal(ks[3], (mid,), jnp.float32),
        "rmean": 0.05 * jax.random.normal(ks[4], (mid,), jnp.float32),
        "rvar":  1.0 + 0.1 * jax.random.uniform(ks[5], (mid,), jnp.float32),
        "wh":    jax.random.normal(ks[6], (C, mid), jnp.float32) * 0.5,
        "bh":    0.1 * jax.random.normal(ks[7], (C,), jnp.float32),
        "ww":    jax.random.normal(ks[8], (C, mid), jnp.float32) * 0.5,
        "bw":    0.1 * jax.random.normal(ks[9], (C,), jnp.float32),
    }
    x = jax.random.normal(ks[10], (N, C, H, W), jnp.float32)

    # f32 path: matches the pure-JAX reference.
    out = jax.block_until_ready(coord_attention(x, params))
    ref = jax.block_until_ready(reference(x, params))
    assert out.shape == (N, C, H, W)
    np.testing.assert_allclose(np.asarray(out), np.asarray(ref), rtol=1e-4, atol=1e-4)

    # bf16 I/O path (HBM-bandwidth optimization for v6e/v7x); accumulation stays f32.
    out_bf16 = jax.block_until_ready(coord_attention(x, params, io_dtype=jnp.bfloat16))
    np.testing.assert_allclose(np.asarray(out_bf16.astype(jnp.float32)),
                               np.asarray(ref), rtol=1e-1, atol=1e-1)

    print("KERNEL_OK")
</pallas_src>

<mosaic_0001>
module attributes {stable_mosaic.version = 11 : i64} {
  func.func @kernel(%arg0: i32, %arg1: memref<8x256xf32, #tpu.memory_space<vmem>>, %arg2: memref<256x32xf32, #tpu.memory_space<vmem>>, %arg3: memref<16x256xf32, #tpu.memory_space<vmem>>, %arg4: memref<16x256xf32, #tpu.memory_space<vmem>>, %arg5: memref<16x8xf32, #tpu.memory_space<vmem>>, %arg6: memref<16x1xf32, #tpu.memory_space<vmem>>, %arg7: memref<8x16xf32, #tpu.memory_space<vmem>>, %arg8: memref<8x1xf32, #tpu.memory_space<vmem>>, %arg9: memref<8x16xf32, #tpu.memory_space<vmem>>, %arg10: memref<8x1xf32, #tpu.memory_space<vmem>>, %arg11: memref<8x256xf32, #tpu.memory_space<vmem>>) attributes {dimension_semantics = [#tpu.dimension_semantics<parallel>], iteration_bounds = array<i64: 1>, scalar_prefetch = 0 : i64, scratch_operands = 0 : i64, tpu.core_type = #tpu.core_type<tc>, window_params = [{transform_indices = @transform_0, window_bounds = array<i64: 8, 256>}, {pipeline_mode = #tpu.pipeline_mode<synchronous>, transform_indices = @transform_1, window_bounds = array<i64: 256, 32>}, {pipeline_mode = #tpu.pipeline_mode<synchronous>, transform_indices = @transform_2, window_bounds = array<i64: 16, 256>}, {pipeline_mode = #tpu.pipeline_mode<synchronous>, transform_indices = @transform_3, window_bounds = array<i64: 16, 256>}, {pipeline_mode = #tpu.pipeline_mode<synchronous>, transform_indices = @transform_4, window_bounds = array<i64: 16, 8>}, {pipeline_mode = #tpu.pipeline_mode<synchronous>, transform_indices = @transform_5, window_bounds = array<i64: 16, 1>}, {pipeline_mode = #tpu.pipeline_mode<synchronous>, transform_indices = @transform_6, window_bounds = array<i64: 8, 16>}, {pipeline_mode = #tpu.pipeline_mode<synchronous>, transform_indices = @transform_7, window_bounds = array<i64: 8, 1>}, {pipeline_mode = #tpu.pipeline_mode<synchronous>, transform_indices = @transform_8, window_bounds = array<i64: 8, 16>}, {pipeline_mode = #tpu.pipeline_mode<synchronous>, transform_indices = @transform_9, window_bounds = array<i64: 8, 1>}, {transform_indices = @transform_10, window_bounds = array<i64: 8, 256>}]} {
    %c0 = arith.constant 0 : index
    %c0_0 = arith.constant 0 : index
    %0 = vector.load %arg1[%c0, %c0_0] : memref<8x256xf32, #tpu.memory_space<vmem>>, vector<8x256xf32>
    %c0_1 = arith.constant 0 : index
    %c0_2 = arith.constant 0 : index
    %1 = vector.load %arg2[%c0_1, %c0_2] : memref<256x32xf32, #tpu.memory_space<vmem>>, vector<256x32xf32>
    %cst = arith.constant dense<0.000000e+00> : vector<8x32xf32>
    %2 = tpu.matmul %0, %1, %cst {dimension_numbers = #tpu.dot_dimension_numbers<[1], [0], [0], [1], [0, 0, 1, 1], [], []>, precision = #tpu.contract_precision<fp32>} : vector<8x256xf32>, vector<256x32xf32>, vector<8x32xf32> -> vector<8x32xf32>
    %c0_3 = arith.constant 0 : index
    %c0_4 = arith.constant 0 : index
    %3 = vector.load %arg5[%c0_3, %c0_4] : memref<16x8xf32, #tpu.memory_space<vmem>>, vector<16x8xf32>
    %cst_5 = arith.constant dense<0.000000e+00> : vector<16x32xf32>
    %4 = tpu.matmul %3, %2, %cst_5 {dimension_numbers = #tpu.dot_dimension_numbers<[1], [0], [0], [1], [0, 0, 1, 1], [], []>, precision = #tpu.contract_precision<fp32>} : vector<16x8xf32>, vector<8x32xf32>, vector<16x32xf32> -> vector<16x32xf32>
    %c0_6 = arith.constant 0 : index
    %c0_7 = arith.constant 0 : index
    %5 = vector.load %arg6[%c0_6, %c0_7] : memref<16x1xf32, #tpu.memory_space<vmem>>, vector<16x1xf32>
    %6 = vector.broadcast %5 : vector<16x1xf32> to vector<16x32xf32>
    %7 = arith.addf %4, %6 : vector<16x32xf32>
    %8 = arith.negf %7 : vector<16x32xf32>
    %9 = math.exp %8 : vector<16x32xf32>
    %cst_8 = arith.constant 1.000000e+00 : f32
    %10 = vector.broadcast %cst_8 : f32 to vector<16x32xf32>
    %11 = arith.addf %10, %9 : vector<16x32xf32>
    %12 = arith.divf %10, %11 : vector<16x32xf32>
    %13 = arith.mulf %7, %12 : vector<16x32xf32>
    %14 = vector.extract_strided_slice %13 {offsets = [0, 0], sizes = [16, 16], strides = [1, 1]} : vector<16x32xf32> to vector<16x16xf32>
    %15 = vector.extract_strided_slice %13 {offsets = [0, 16], sizes = [16, 16], strides = [1, 1]} : vector<16x32xf32> to vector<16x16xf32>
    %c0_9 = arith.constant 0 : index
    %c0_10 = arith.constant 0 : index
    %16 = vector.load %arg7[%c0_9, %c0_10] : memref<8x16xf32, #tpu.memory_space<vmem>>, vector<8x16xf32>
    %cst_11 = arith.constant dense<0.000000e+00> : vector<8x16xf32>
    %17 = tpu.matmul %16, %14, %cst_11 {dimension_numbers = #tpu.dot_dimension_numbers<[1], [0], [0], [1], [0, 0, 1, 1], [], []>, precision = #tpu.contract_precision<fp32>} : vector<8x16xf32>, vector<16x16xf32>, vector<8x16xf32> -> vector<8x16xf32>
    %c0_12 = arith.constant 0 : index
    %c0_13 = arith.constant 0 : index
    %18 = vector.load %arg8[%c0_12, %c0_13] : memref<8x1xf32, #tpu.memory_space<vmem>>, vector<8x1xf32>
    %19 = vector.broadcast %18 : vector<8x1xf32> to vector<8x16xf32>
    %20 = arith.addf %17, %19 : vector<8x16xf32>
    %21 = arith.negf %20 : vector<8x16xf32>
    %22 = math.exp %21 : vector<8x16xf32>
    %cst_14 = arith.constant 1.000000e+00 : f32
    %23 = vector.broadcast %cst_14 : f32 to vector<8x16xf32>
    %24 = arith.addf %23, %22 : vector<8x16xf32>
    %25 = arith.divf %23, %24 : vector<8x16xf32>
    %c0_15 = arith.constant 0 : index
    %c0_16 = arith.constant 0 : index
    %26 = vector.load %arg9[%c0_15, %c0_16] : memref<8x16xf32, #tpu.memory_space<vmem>>, vector<8x16xf32>
    %cst_17 = arith.constant dense<0.000000e+00> : vector<8x16xf32>
    %27 = tpu.matmul %26, %15, %cst_17 {dimension_numbers = #tpu.dot_dimension_numbers<[1], [0], [0], [1], [0, 0, 1, 1], [], []>, precision = #tpu.contract_precision<fp32>} : vector<8x16xf32>, vector<16x16xf32>, vector<8x16xf32> -> vector<8x16xf32>
    %c0_18 = arith.constant 0 : index
    %c0_19 = arith.constant 0 : index
    %28 = vector.load %arg10[%c0_18, %c0_19] : memref<8x1xf32, #tpu.memory_space<vmem>>, vector<8x1xf32>
    %29 = vector.broadcast %28 : vector<8x1xf32> to vector<8x16xf32>
    %30 = arith.addf %27, %29 : vector<8x16xf32>
    %31 = arith.negf %30 : vector<8x16xf32>
    %32 = math.exp %31 : vector<8x16xf32>
    %cst_20 = arith.constant 1.000000e+00 : f32
    %33 = vector.broadcast %cst_20 : f32 to vector<8x16xf32>
    %34 = arith.addf %33, %32 : vector<8x16xf32>
    %35 = arith.divf %33, %34 : vector<8x16xf32>
    %c0_21 = arith.constant 0 : index
    %c0_22 = arith.constant 0 : index
    %36 = vector.load %arg3[%c0_21, %c0_22] : memref<16x256xf32, #tpu.memory_space<vmem>>, vector<16x256xf32>
    %cst_23 = arith.constant dense<0.000000e+00> : vector<8x256xf32>
    %37 = tpu.matmul %25, %36, %cst_23 {dimension_numbers = #tpu.dot_dimension_numbers<[1], [0], [0], [1], [0, 0, 1, 1], [], []>, precision = #tpu.contract_precision<fp32>} : vector<8x16xf32>, vector<16x256xf32>, vector<8x256xf32> -> vector<8x256xf32>
    %c0_24 = arith.constant 0 : index
    %c0_25 = arith.constant 0 : index
    %38 = vector.load %arg4[%c0_24, %c0_25] : memref<16x256xf32, #tpu.memory_space<vmem>>, vector<16x256xf32>
    %cst_26 = arith.constant dense<0.000000e+00> : vector<8x256xf32>
    %39 = tpu.matmul %35, %38, %cst_26 {dimension_numbers = #tpu.dot_dimension_numbers<[1], [0], [0], [1], [0, 0, 1, 1], [], []>, precision = #tpu.contract_precision<fp32>} : vector<8x16xf32>, vector<16x256xf32>, vector<8x256xf32> -> vector<8x256xf32>
    %40 = arith.mulf %37, %39 : vector<8x256xf32>
    %41 = arith.mulf %0, %40 : vector<8x256xf32>
    %c0_27 = arith.constant 0 : index
    %c0_28 = arith.constant 0 : index
    %42 = vector.load %arg11[%c0_27, %c0_28] : memref<8x256xf32, #tpu.memory_space<vmem>>, vector<8x256xf32>
    tpu.vector_store %arg11[%c0_27, %c0_28], %41 {strides = array<i32>} : memref<8x256xf32, #tpu.memory_space<vmem>>, vector<8x256xf32>,
    return
  }
  func.func @transform_0(%arg0: i32) -> (i32, i32) {
    %c0_i32 = arith.constant 0 : i32
    %c0_i32_0 = arith.constant 0 : i32
    return %arg0, %c0_i32 : i32, i32
  }
  func.func @transform_1(%arg0: i32) -> (i32, i32) {
    %c0_i32 = arith.constant 0 : i32
    %c0_i32_0 = arith.constant 0 : i32
    %c0_i32_1 = arith.constant 0 : i32
    return %c0_i32, %c0_i32_0 : i32, i32
  }
  func.func @transform_2(%arg0: i32) -> (i32, i32) {
    %c0_i32 = arith.constant 0 : i32
    %c0_i32_0 = arith.constant 0 : i32
    %c0_i32_1 = arith.constant 0 : i32
    return %c0_i32, %c0_i32_0 : i32, i32
  }
  func.func @transform_3(%arg0: i32) -> (i32, i32) {
    %c0_i32 = arith.constant 0 : i32
    %c0_i32_0 = arith.constant 0 : i32
    %c0_i32_1 = arith.constant 0 : i32
    return %c0_i32, %c0_i32_0 : i32, i32
  }
  func.func @transform_4(%arg0: i32) -> (i32, i32) {
    %c0_i32 = arith.constant 0 : i32
    %c0_i32_0 = arith.constant 0 : i32
    %c0_i32_1 = arith.constant 0 : i32
    return %c0_i32, %c0_i32_0 : i32, i32
  }
  func.func @transform_5(%arg0: i32) -> (i32, i32) {
    %c0_i32 = arith.constant 0 : i32
    %c0_i32_0 = arith.constant 0 : i32
    %c0_i32_1 = arith.constant 0 : i32
    return %c0_i32, %c0_i32_0 : i32, i32
  }
  func.func @transform_6(%arg0: i32) -> (i32, i32) {
    %c0_i32 = arith.constant 0 : i32
    %c0_i32_0 = arith.constant 0 : i32
    %c0_i32_1 = arith.constant 0 : i32
    return %c0_i32, %c0_i32_0 : i32, i32
  }
  func.func @transform_7(%arg0: i32) -> (i32, i32) {
    %c0_i32 = arith.constant 0 : i32
    %c0_i32_0 = arith.constant 0 : i32
    %c0_i32_1 = arith.constant 0 : i32
    return %c0_i32, %c0_i32_0 : i32, i32
  }
  func.func @transform_8(%arg0: i32) -> (i32, i32) {
    %c0_i32 = arith.constant 0 : i32
    %c0_i32_0 = arith.constant 0 : i32
    %c0_i32_1 = arith.constant 0 : i32
    return %c0_i32, %c0_i32_0 : i32, i32
  }
  func.func @transform_9(%arg0: i32) -> (i32, i32) {
    %c0_i32 = arith.constant 0 : i32
    %c0_i32_0 = arith.constant 0 : i32
    %c0_i32_1 = arith.constant 0 : i32
    return %c0_i32, %c0_i32_0 : i32, i32
  }
  func.func @transform_10(%arg0: i32) -> (i32, i32) {
    %c0_i32 = arith.constant 0 : i32
    %c0_i32_0 = arith.constant 0 : i32
    return %arg0, %c0_i32 : i32, i32
  }
}

</mosaic_0001>

<bundles_post_ra>
// kernel: tpu_custom_call.1
= control target key start
LH: loop header
LB: loop body
LE: loop exit
PB: predicated region body
PF: predicated region fallthrough
CT: control target
= control target key end

     0   :  { %s4951_s0 = inlined_call_operand.vmem [shape: f32[8,256], index: 0, kind: input, shape index: {}]   ;;  %s4952_s1 = inlined_call_operand.vmem [shape: f32[256,32], index: 1, kind: input, shape index: {}]   ;;  %s4953_s2 = inlined_call_operand.vmem [shape: f32[16,256], index: 2, kind: input, shape index: {}]   ;;  %s4954_s3 = inlined_call_operand.vmem [shape: f32[16,256], index: 3, kind: input, shape index: {}]   ;;  %s4955_s4 = inlined_call_operand.vmem [shape: f32[16,8], index: 4, kind: input, shape index: {}]   ;;  %s4956_s5 = inlined_call_operand.vmem [shape: f32[16,1], index: 5, kind: input, shape index: {}]   ;;  %s4957_s6 = inlined_call_operand.vmem [shape: f32[8,16], index: 6, kind: input, shape index: {}]   ;;  %s4958_s7 = inlined_call_operand.vmem [shape: f32[8,1], index: 7, kind: input, shape index: {}]   ;;  %s4959_s8 = inlined_call_operand.vmem [shape: f32[8,16], index: 8, kind: input, shape index: {}]   ;;  %s4960_s9 = inlined_call_operand.vmem [shape: f32[8,1], index: 9, kind: input, shape index: {}]   ;;  %s4961_s10 = inlined_call_operand.hbm [shape: f32[8,256], index: 10, kind: output, shape index: {}]  }
   0x1   :  { %v54_v0 = vld [vmem:[%s4952_s1 + $0x80] sm:$0xff]  ;;  %v55_v1 = vld [vmem:[%s4952_s1 + $0x88] sm:$0xff]  ;;  %v56_v7 = vld [vmem:[%s4952_s1 + $0x90] sm:$0xff] }
   0x2   :  { %v38_v2 = vld [vmem:[%s4952_s1] sm:$0xff]  ;;  %v119_v3 = vand.u32 4294901760, %v54_v0  ;;  %v122_v4 = vand.u32 4294901760, %v55_v1  ;;  %v39_v5 = vld [vmem:[%s4952_s1 + $0x8] sm:$0xff]  ;;  %v57_v8 = vld [vmem:[%s4952_s1 + $0x98] sm:$0xff]  ;;  %v125_v10 = vand.u32 4294901760, %v56_v7 }
   0x3   :  { %v71_v6 = vand.u32 4294901760, %v38_v2  ;;  %v74_v9 = vand.u32 4294901760, %v39_v5  ;;  %v128_v11 = vand.u32 4294901760, %v57_v8  ;;  %v40_v12 = vld [vmem:[%s4952_s1 + $0x10] sm:$0xff]  ;;  %v41_v13 = vld [vmem:[%s4952_s1 + $0x18] sm:$0xff]  ;;  %v58_v18 = vld [vmem:[%s4952_s1 + $0xa0] sm:$0xff] }
   0x4   :  { %v4278_v14 = vpack.c.bf16 %v122_v4, %v119_v3  ;;  %v77_v16 = vand.u32 4294901760, %v40_v12  ;;  %v80_v17 = vand.u32 4294901760, %v41_v13  ;;  %v59_v19 = vld [vmem:[%s4952_s1 + $0xa8] sm:$0xff]  ;;  %v42_v23 = vld [vmem:[%s4952_s1 + $0x20] sm:$0xff]  ;;  %v4301_v25 = vsub.f32 %v56_v7, %v125_v10  ;;  %v60_v37 = vld [vmem:[%s4952_s1 + $0xb0] sm:$0xff] }
   0x5   :  { %v4280_v15 = vsub.f32 %v38_v2, %v71_v6  ;;  %v4288_v20 = vpack.c.bf16 %v74_v9, %v71_v6  ;;  %v4290_v21 = vsub.f32 %v39_v5, %v74_v9  ;;  %v4292_v22 = vpack.c.bf16 %v128_v11, %v125_v10  ;;  %v43_v24 = vld [vmem:[%s4952_s1 + $0x28] sm:$0xff]  ;;  %v61_v42 = vld [vmem:[%s4952_s1 + $0xb8] sm:$0xff]  ;;  %v44_v55 = vld [vmem:[%s4952_s1 + $0x30] sm:$0xff] }
   0x6   :  { %3814 = vmatprep.subr.bf16.mxu0 %v4278_v14  ;;  %v4303_v26 = vsub.f32 %v57_v8, %v128_v11  ;;  %v4305_v27 = vpack.c.bf16 %v80_v17, %v77_v16  ;;  %v4307_v28 = vsub.f32 %v40_v12, %v77_v16  ;;  %v131_v29 = vand.u32 4294901760, %v58_v18  ;;  %v45_v56 = vld [vmem:[%s4952_s1 + $0x38] sm:$0xff] }
   0x7   :  { %3816 = vmatpush3.bf16.msra.mxu0 %v4288_v20  ;;  %v134_v30 = vand.u32 4294901760, %v59_v19  ;;  %v4310_v31 = vsub.f32 %v54_v0, %v119_v3  ;;  %v4312_v32 = vsub.f32 %v55_v1, %v122_v4  ;;  %v83_v33 = vand.u32 4294901760, %v42_v23 }
   0x8   :  { %3818 = vmatprep.subr.bf16.mxu0 %v4292_v22  ;;  %v86_v34 = vand.u32 4294901760, %v43_v24  ;;  %v4978_v35 = vand.u32 4294901760, %v4280_v15  ;;  %v4977_v36 = vand.u32 4294901760, %v4290_v21  ;;  %v4320_v38 = vsub.f32 %v41_v13, %v80_v17 }
   0x9   :  { %v4322_v39 = vpack.c.bf16 %v134_v30, %v131_v29  ;;  %v4324_v40 = vsub.f32 %v58_v18, %v131_v29  ;;  %v4983_v41 = vand.u32 4294901760, %v4310_v31  ;;  %v4330_v43 = vsub.f32 %v59_v19, %v134_v30 }
   0xa   :  { %v4980_v44 = vand.u32 4294901760, %v4312_v32  ;;  %v4333_v45 = vpack.c.bf16 %v86_v34, %v83_v33  ;;  %v4335_v46 = vsub.f32 %v42_v23, %v83_v33  ;;  %v186_v48 = vsub.f32 %v4280_v15, %v4978_v35 }
   0xb   :  { %3820 = vmatpush3.bf16.msra.mxu0 %v4305_v27  ;;  %v298_v47 = vsub.f32 %v4310_v31, %v4983_v41  ;;  %v193_v49 = vsub.f32 %v4290_v21, %v4977_v36  ;;  %v137_v50 = vand.u32 4294901760, %v60_v37  ;;  %v140_v52 = vand.u32 4294901760, %v61_v42 }
   0xc   :  { %3822 = vmatprep.subr.bf16.mxu0 %v4322_v39  ;;  %v305_v51 = vsub.f32 %v4312_v32, %v4980_v44  ;;  %v4975_v53 = vand.u32 4294901760, %v4301_v25  ;;  %v4974_v54 = vand.u32 4294901760, %v4303_v26  ;;  %v4359_v58 = vsub.f32 %v43_v24, %v86_v34 }
   0xd   :  { %v299_v57 = vand.u32 4294901760, %v298_v47  ;;  %v187_v59 = vand.u32 4294901760, %v186_v48  ;;  %v194_v60 = vand.u32 4294901760, %v193_v49 }
   0xe   :  { %15 = vsyncpa [#allocation3], 0  ;;  %v306_v61 = vand.u32 4294901760, %v305_v51  ;;  %v4361_v62 = vpack.c.bf16 %v140_v52, %v137_v50  ;;  %v4363_v63 = vsub.f32 %v60_v37, %v137_v50  ;;  %v312_v0 = vsub.f32 %v4301_v25, %v4975_v53  ;;  %v62_v5 = vld [vmem:[%s4952_s1 + $0xc0] sm:$0xff]  ;;  %v63_v6 = vld [vmem:[%s4952_s1 + $0xc8] sm:$0xff] }
   0xf   :  { %3824 = vmatpush3.bf16.msra.mxu0 %v4333_v45  ;;  %v3847_v1 = vpack.c.bf16 %v194_v60, %v187_v59  ;;  %v319_v2 = vsub.f32 %v4303_v26, %v4974_v54  ;;  %v89_v3 = vand.u32 4294901760, %v44_v55  ;;  %v92_v4 = vand.u32 4294901760, %v45_v56  ;;  %v46_v11 = vld [vmem:[%s4952_s1 + $0x40] sm:$0xff]  ;;  %v47_v29 = vld [vmem:[%s4952_s1 + $0x48] sm:$0xff] }
  0x10   :  { %v3845_v7 = vpack.c.bf16 %v306_v61, %v299_v57  ;;  %3826 = vmatprep.subr.bf16.mxu0 %v4361_v62  ;;  %v313_v8 = vand.u32 4294901760, %v312_v0  ;;  %v4973_v9 = vand.u32 4294901760, %v4307_v28  ;;  %v4970_v10 = vand.u32 4294901760, %v4320_v38  ;;  %v65_v57 = vld [vmem:[%s4952_s1 + $0xd8] sm:$0xff] }
  0x11   :  { %v4384_v12 = vsub.f32 %v61_v42, %v140_v52  ;;  %v320_v13 = vand.u32 4294901760, %v319_v2  ;;  %v4386_v16 = vpack.c.bf16 %v92_v4, %v89_v3  ;;  %v4388_v17 = vsub.f32 %v44_v55, %v89_v3 }
  0x12   :  { %3846 = vmatprep.subr.bf16.mxu1 %v3845_v7  ;;  %v200_v18 = vsub.f32 %v4307_v28, %v4973_v9  ;;  %v207_v19 = vsub.f32 %v4320_v38, %v4970_v10  ;;  %v143_v23 = vand.u32 4294901760, %v62_v5  ;;  %v146_v24 = vand.u32 4294901760, %v63_v6 }
  0x13   :  { %3848 = vmatpush3.bf16.msra.mxu1 %v3847_v1  ;;  %v3849_v30 = vpack.c.bf16 %v320_v13, %v313_v8  ;;  %3828 = vmatpush3.bf16.msra.mxu0 %v4386_v16  ;;  %v4968_v33 = vand.u32 4294901760, %v4324_v40  ;;  %v4967_v34 = vand.u32 4294901760, %v4330_v43  ;;  %v95_v37 = vand.u32 4294901760, %v46_v11  ;;  %v48_v1 = vld [vmem:[%s4952_s1 + $0x50] sm:$0xff] }
  0x14   :  { %v4402_v42 = vsub.f32 %v45_v56, %v92_v4  ;;  %v201_v47 = vand.u32 4294901760, %v200_v18  ;;  %v208_v48 = vand.u32 4294901760, %v207_v19  ;;  %v4404_v49 = vpack.c.bf16 %v146_v24, %v143_v23  ;;  %v64_v56 = vld [vmem:[%s4952_s1 + $0xd0] sm:$0xff]  ;;  %v49_v18 = vld [vmem:[%s4952_s1 + $0x58] sm:$0xff] }
  0x15   :  { %3850 = vmatprep.subr.bf16.mxu1 %v3849_v30  ;;  %v4406_v50 = vsub.f32 %v62_v5, %v143_v23  ;;  %v326_v51 = vsub.f32 %v4324_v40, %v4968_v33  ;;  %v333_v52 = vsub.f32 %v4330_v43, %v4967_v34  ;;  %v98_v55 = vand.u32 4294901760, %v47_v29 }
  0x16   :  { %v3851_v59 = vpack.c.bf16 %v208_v48, %v201_v47  ;;  %3830 = vmatprep.subr.bf16.mxu0 %v4404_v49  ;;  %v4421_v60 = vsub.f32 %v63_v6, %v146_v24  ;;  %v4965_v61 = vand.u32 4294901760, %v4335_v46  ;;  %v4964_v0 = vand.u32 4294901760, %v4359_v58 }
  0x17   :  { %v327_v2 = vand.u32 4294901760, %v326_v51  ;;  %v334_v3 = vand.u32 4294901760, %v333_v52  ;;  %v4428_v4 = vpack.c.bf16 %v98_v55, %v95_v37  ;;  %v4430_v5 = vsub.f32 %v46_v11, %v95_v37 }
  0x18   :  { %3852 = vmatpush3.bf16.msra.mxu1 %v3851_v59  ;;  %v214_v6 = vsub.f32 %v4335_v46, %v4965_v61  ;;  %v221_v7 = vsub.f32 %v4359_v58, %v4964_v0  ;;  %v149_v8 = vand.u32 4294901760, %v64_v56  ;;  %v152_v13 = vand.u32 4294901760, %v65_v57 }
  0x19   :  { %v3853_v19 = vpack.c.bf16 %v334_v3, %v327_v2  ;;  %3832 = vmatpush3.bf16.msra.mxu0 %v4428_v4  ;;  %v4963_v11 = vand.u32 4294901760, %v4363_v63  ;;  %v4962_v23 = vand.u32 4294901760, %v4384_v12  ;;  %v101_v24 = vand.u32 4294901760, %v48_v1 }
  0x1a   :  { %v4444_v30 = vsub.f32 %v47_v29, %v98_v55  ;;  %v215_v37 = vand.u32 4294901760, %v214_v6  ;;  %v222_v47 = vand.u32 4294901760, %v221_v7  ;;  %v4446_v48 = vpack.c.bf16 %v152_v13, %v149_v8  ;;  %v66_v29 = vld [vmem:[%s4952_s1 + $0xe0] sm:$0xff]  ;;  %v67_v55 = vld [vmem:[%s4952_s1 + $0xe8] sm:$0xff] }
  0x1b   :  { %3854 = vmatprep.subr.bf16.mxu1 %v3853_v19  ;;  %v4448_v51 = vsub.f32 %v64_v56, %v149_v8  ;;  %v340_v52 = vsub.f32 %v4363_v63, %v4963_v11  ;;  %v347_v59 = vsub.f32 %v4384_v12, %v4962_v23  ;;  %v104_v2 = vand.u32 4294901760, %v49_v18  ;;  %v50_v8 = vld [vmem:[%s4952_s1 + $0x60] sm:$0xff] }
  0x1c   :  { %v3855_v3 = vpack.c.bf16 %v222_v47, %v215_v37  ;;  %3834 = vmatprep.subr.bf16.mxu0 %v4446_v48  ;;  %v4463_v56 = vsub.f32 %v65_v57, %v152_v13  ;;  %v4966_v6 = vand.u32 4294901760, %v4388_v17  ;;  %v4969_v7 = vand.u32 4294901760, %v4402_v42 }
  0x1d   :  { %v341_v19 = vand.u32 4294901760, %v340_v52  ;;  %v348_v23 = vand.u32 4294901760, %v347_v59  ;;  %v4470_v11 = vpack.c.bf16 %v104_v2, %v101_v24  ;;  %v4472_v0 = vsub.f32 %v48_v1, %v101_v24  ;;  %v51_v52 = vld [vmem:[%s4952_s1 + $0x68] sm:$0xff] }
  0x1e   :  { %3856 = vmatpush3.bf16.msra.mxu1 %v3855_v3  ;;  %v228_v57 = vsub.f32 %v4388_v17, %v4966_v6  ;;  %v235_v13 = vsub.f32 %v4402_v42, %v4969_v7  ;;  %v155_v37 = vand.u32 4294901760, %v66_v29  ;;  %v158_v47 = vand.u32 4294901760, %v67_v55 }
  0x1f   :  { %5007 = vst [vmem:[#allocation5_spill] sm:$0xff] %v4470_v11  ;;  %v3857_v59 = vpack.c.bf16 %v348_v23, %v341_v19  ;;  %3836 = vmatpush3.bf16.msra.mxu0 %v4470_v11  ;;  %v4972_v1 = vand.u32 4294901760, %v4406_v50  ;;  %v4971_v24 = vand.u32 4294901760, %v4421_v60  ;;  %v107_v3 = vand.u32 4294901760, %v50_v8 }
  0x20   :  { %v4486_v61 = vsub.f32 %v49_v18, %v104_v2  ;;  %v229_v6 = vand.u32 4294901760, %v228_v57  ;;  %v236_v34 = vand.u32 4294901760, %v235_v13  ;;  %v4488_v33 = vpack.c.bf16 %v158_v47, %v155_v37  ;;  %v68_v18 = vld [vmem:[%s4952_s1 + $0xf0] sm:$0xff]  ;;  %v69_v2 = vld [vmem:[%s4952_s1 + $0xf8] sm:$0xff] }
  0x21   :  { %3858 = vmatprep.subr.bf16.mxu1 %v3857_v59  ;;  %v4490_v7 = vsub.f32 %v66_v29, %v155_v37  ;;  %v354_v23 = vsub.f32 %v4406_v50, %v4972_v1  ;;  %v361_v19 = vsub.f32 %v4421_v60, %v4971_v24  ;;  %v110_v10 = vand.u32 4294901760, %v51_v52  ;;  %v52_v59 = vld [vmem:[%s4952_s1 + $0x70] sm:$0xff] }
  0x22   :  { %5008 = vst [vmem:[#allocation6_spill] sm:$0xff] %v4488_v33  ;;  %v3859_v57 = vpack.c.bf16 %v236_v34, %v229_v6  ;;  %3838 = vmatprep.subr.bf16.mxu0 %v4488_v33  ;;  %v4505_v29 = vsub.f32 %v67_v55, %v158_v47  ;;  %v4976_v13 = vand.u32 4294901760, %v4430_v5  ;;  %v4979_v37 = vand.u32 4294901760, %v4444_v30 }
  0x23   :  { %v355_v24 = vand.u32 4294901760, %v354_v23  ;;  %v362_v1 = vand.u32 4294901760, %v361_v19  ;;  %v4512_v9 = vpack.c.bf16 %v110_v10, %v107_v3  ;;  %v4514_v54 = vsub.f32 %v50_v8, %v107_v3  ;;  %v53_v23 = vld [vmem:[%s4952_s1 + $0x78] sm:$0xff] }
  0x24   :  { %3860 = vmatpush3.bf16.msra.mxu1 %v3859_v57  ;;  %v242_v34 = vsub.f32 %v4430_v5, %v4976_v13  ;;  %v249_v55 = vsub.f32 %v4444_v30, %v4979_v37  ;;  %v161_v6 = vand.u32 4294901760, %v68_v18  ;;  %v164_v47 = vand.u32 4294901760, %v69_v2 }
  0x25   :  { %5009 = vst [vmem:[#allocation7_spill] sm:$0xff] %v4512_v9  ;;  %v3861_v19 = vpack.c.bf16 %v362_v1, %v355_v24  ;;  %3840 = vmatpush3.bf16.msra.mxu0 %v4512_v9  ;;  %v4982_v8 = vand.u32 4294901760, %v4448_v51  ;;  %v4981_v3 = vand.u32 4294901760, %v4463_v56  ;;  %v113_v57 = vand.u32 4294901760, %v52_v59 }
  0x26   :  { %v4528_v53 = vsub.f32 %v51_v52, %v110_v10  ;;  %v243_v13 = vand.u32 4294901760, %v242_v34  ;;  %v250_v36 = vand.u32 4294901760, %v249_v55  ;;  %v4530_v35 = vpack.c.bf16 %v164_v47, %v161_v6  ;;  %v37_v10 = vld [vmem:[%s4951_s0 + $0x8] sm:$0xff] }
  0x27   :  { %3862 = vmatprep.subr.bf16.mxu1 %v3861_v19  ;;  %v4532_v37 = vsub.f32 %v68_v18, %v161_v6  ;;  %v368_v1 = vsub.f32 %v4448_v51, %v4982_v8  ;;  %v375_v24 = vsub.f32 %v4463_v56, %v4981_v3  ;;  %v116_v44 = vand.u32 4294901760, %v53_v23  ;;  %v36_v6 = vld [vmem:[%s4951_s0] sm:$0xff] }
  0x28   :  { %5010 = vst [vmem:[#allocation8_spill] sm:$0xff] %v4530_v35  ;;  %v3863_v52 = vpack.c.bf16 %v250_v36, %v243_v13  ;;  %3842 = vmatprep.subr.bf16.mxu0 %v4530_v35  ;;  %v4544_v34 = vsub.f32 %v69_v2, %v164_v47  ;;  %v4986_v18 = vand.u32 4294901760, %v4472_v0  ;;  %v4987_v55 = vand.u32 4294901760, %v4486_v61 }
  0x29   :  { %v369_v19 = vand.u32 4294901760, %v368_v1  ;;  %v376_v3 = vand.u32 4294901760, %v375_v24  ;;  %v4551_v8 = vpack.c.bf16 %v116_v44, %v113_v57  ;;  %v4553_v41 = vsub.f32 %v52_v59, %v113_v57 }
  0x2a   :  { %3864 = vmatpush3.bf16.msra.mxu1 %v3863_v52  ;;  %v256_v36 = vsub.f32 %v4472_v0, %v4986_v18  ;;  %v263_v2 = vsub.f32 %v4486_v61, %v4987_v55  ;;  %v4561_v13 = vand.u32 4294901760, %v37_v10  ;;  %v4990_v47 = vand.u32 4294901760, %v4490_v7 }
  0x2b   :  { %5011 = vst [vmem:[#allocation9_spill] sm:$0xff] %v4551_v8  ;;  %v3865_v35 = vpack.c.bf16 %v376_v3, %v369_v19  ;;  %3844 = vmatpush3.bf16.msra.mxu0 %v4551_v8  ;;  %v4996_v1 = vand.u32 4294901760, %v4505_v29  ;;  %v3877_v59 = vpack.c.bf16 %v4312_v32, %v4310_v31  ;;  %v4568_v57 = vand.u32 4294901760, %v36_v6 }
  0x2c   :  { %5012 = vst [vmem:[#allocation10_spill] sm:$0xff] %v4561_v13  ;;  %v257_v24 = vand.u32 4294901760, %v256_v36  ;;  %v264_v52 = vand.u32 4294901760, %v263_v2  ;;  %v4571_v18 = vsub.f32 %v37_v10, %v4561_v13  ;;  %v382_v55 = vsub.f32 %v4490_v7, %v4990_v47  ;;  %407 = vmatprep.mubr.f32.mxu1 %v4561_v13 }
  0x2d   :  { %3866 = vmatprep.subr.bf16.mxu1 %v3865_v35  ;;  %v389_v3 = vsub.f32 %v4505_v29, %v4996_v1  ;;  %3878 = vmatprep.subr.bf16.mxu0 %v3877_v59  ;;  %v4581_v19 = vsub.f32 %v36_v6, %v4568_v57  ;;  %v4995_v36 = vand.u32 4294901760, %v4514_v54  ;;  %v4997_v10 = vand.u32 4294901760, %v4528_v53 }
  0x2e   :  { %v4585_v2 = vsub.f32 %v53_v23, %v116_v44  ;;  %v3867_v8 = vpack.c.bf16 %v264_v52, %v257_v24  ;;  %v4998_v47 = vand.u32 4294901760, %v4571_v18  ;;  %v383_v9 = vand.u32 4294901760, %v382_v55 }
  0x2f   :  { %v390_v13 = vand.u32 4294901760, %v389_v3  ;;  %v174_v35 = vand.u32 4294901760, %v4581_v19  ;;  %v270_v59 = vsub.f32 %v4514_v54, %v4995_v36  ;;  %v277_v6 = vsub.f32 %v4528_v53, %v4997_v10 }
  0x30   :  { %3868 = vmatpush3.bf16.msra.mxu1 %v3867_v8  ;;  %v169_v44 = vsub.f32 %v4571_v18, %v4998_v47  ;;  %v3879_v23 = vpack.c.bf16 %v4290_v21, %v4280_v15  ;;  %v5003_v55 = vand.u32 4294901760, %v4532_v37  ;;  %v5006_v24 = vand.u32 4294901760, %v4544_v34 }
  0x31   :  { %v3869_v52 = vpack.c.bf16 %v390_v13, %v383_v9  ;;  %v175_v3 = vsub.f32 %v4581_v19, %v174_v35  ;;  %v271_v36 = vand.u32 4294901760, %v270_v59  ;;  %v278_v1 = vand.u32 4294901760, %v277_v6 }
  0x32   :  { %v170_v10 = vand.u32 4294901760, %v169_v44  ;;  %v396_v8 = vsub.f32 %v4532_v37, %v5003_v55  ;;  %v403_v47 = vsub.f32 %v4544_v34, %v5006_v24  ;;  %v5005_v33 = vand.u32 4294901760, %v4553_v41 }
  0x33   :  { %3870 = vmatprep.subr.bf16.mxu1 %v3869_v52  ;;  %v176_v11 = vand.u32 4294901760, %v175_v3  ;;  %v3871_v9 = vpack.c.bf16 %v278_v1, %v271_v36  ;;  %v3881_v13 = vpack.c.bf16 %v4303_v26, %v4301_v25  ;;  %v5004_v59 = vand.u32 4294901760, %v4585_v2 }
  0x34   :  { %171 = vmatprep.mubr.f32.mxu0 %v170_v10  ;;  %v397_v6 = vand.u32 4294901760, %v396_v8  ;;  %v404_v44 = vand.u32 4294901760, %v403_v47  ;;  %v284_v55 = vsub.f32 %v4553_v41, %v5005_v33  ;;  %v3883_v3 = vpack.c.bf16 %v4320_v38, %v4307_v28 }
  0x35   :  { %177 = vmatmul.mubr.f32.vlgmr.msra.gmra.mrb[0].mxu0 %v176_v11  ;;  %3872 = vmatpush3.bf16.msra.mxu1 %v3871_v9  ;;  %v291_v52 = vsub.f32 %v4585_v2, %v5004_v59  ;;  %v3885_v10 = vpack.c.bf16 %v4330_v43, %v4324_v40  ;;  %v3887_v11 = vpack.c.bf16 %v4359_v58, %v4335_v46  ;;  %v5014_v9 = vand.u32 4294901760, %v4312_v32 }
  0x36   :  { %3880 = vmatpush3.bf16.msra.mxu0 %v3879_v23  ;;  %v3873_v1 = vpack.c.bf16 %v404_v44, %v397_v6  ;;  %v285_v36 = vand.u32 4294901760, %v284_v55  ;;  %544 = vmatprep.mubr.f32.mxu0 %v4571_v18  ;;  %v3889_v8 = vpack.c.bf16 %v4384_v12, %v4363_v63  ;;  %v5013_v55 = vand.u32 4294901760, %v4310_v31 }
  0x37   :  { %3882 = vmatprep.subr.bf16.mxu0 %v3881_v13  ;;  %v292_v47 = vand.u32 4294901760, %v291_v52  ;;  %v5015_v44 = vand.u32 4294901760, %v4280_v15  ;;  %v5016_v13 = vand.u32 4294901760, %v4290_v21  ;;  %v5017_v59 = vand.u32 4294901760, %v4301_v25 }
  0x38   :  { %3874 = vmatprep.subr.bf16.mxu1 %v3873_v1  ;;  %v3941_v6 = vpack.c.bf16 %v5014_v9, %v5013_v55  ;;  %v5018_v1 = vand.u32 4294901760, %v4303_v26  ;;  %v5019_v24 = vand.u32 4294901760, %v4307_v28  ;;  %v5021_v31 = vand.u32 4294901760, %v4324_v40 }
  0x39   :  { %v3875_v23 = vpack.c.bf16 %v292_v47, %v285_v36  ;;  %v3943_v52 = vpack.c.bf16 %v5016_v13, %v5015_v44  ;;  %v5020_v36 = vand.u32 4294901760, %v4320_v38  ;;  %v5022_v32 = vand.u32 4294901760, %v4330_v43  ;;  %v5037_v13 = vld [vmem:[#allocation7_spill] sm:$0xff] }
  0x3a   :  { %v3945_v33 = vpack.c.bf16 %v5018_v1, %v5017_v59  ;;  %3884 = vmatpush3.bf16.msra.mxu0 %v3883_v3  ;;  %v5023_v15 = vand.u32 4294901760, %v4335_v46  ;;  %v5024_v21 = vand.u32 4294901760, %v4359_v58  ;;  %v5025_v25 = vand.u32 4294901760, %v4363_v63  ;;  %v5038_v1 = vld [vmem:[#allocation8_spill] sm:$0xff] }
  0x3b   :  { %v3947_v47 = vpack.c.bf16 %v5020_v36, %v5019_v24  ;;  %v3949_v55 = vpack.c.bf16 %v5022_v32, %v5021_v31  ;;  %v5026_v26 = vand.u32 4294901760, %v4384_v12  ;;  %3876 = vmatpush3.bf16.msra.mxu1 %v3875_v23  ;;  %3886 = vmatprep.subr.bf16.mxu0 %v3885_v10  ;;  %v5027_v28 = vand.u32 4294901760, %v4388_v17  ;;  %v5039_v36 = vld [vmem:[#allocation9_spill] sm:$0xff] }
  0x3c   :  { %v3951_v9 = vpack.c.bf16 %v5024_v21, %v5023_v15  ;;  %v5028_v38 = vand.u32 4294901760, %v4402_v42  ;;  %v5029_v43 = vand.u32 4294901760, %v4406_v50  ;;  %v5030_v24 = vand.u32 4294901760, %v4421_v60  ;;  %3910 = vmatprep.subr.bf16.mxu1 %v4278_v14 }
  0x3d   :  { %v3953_v59 = vpack.c.bf16 %v5026_v26, %v5025_v25  ;;  %v5031_v58 = vand.u32 4294901760, %v4430_v5  ;;  %v5032_v3 = vand.u32 4294901760, %v4444_v30  ;;  %v3891_v12 = vpack.c.bf16 %v4402_v42, %v4388_v17 }
  0x3e   :  { %v3955_v40 = vpack.c.bf16 %v5028_v38, %v5027_v28  ;;  %v3957_v46 = vpack.c.bf16 %v5030_v24, %v5029_v43  ;;  %409 = vmatmul.mubr.f32.vlgmr.msra.gmra.mrb[0].mxu1 %v4568_v57  ;;  %3888 = vmatpush3.bf16.msra.mxu0 %v3887_v11  ;;  %v3893_v10 = vpack.c.bf16 %v4421_v60, %v4406_v50  ;;  %v5033_v23 = vand.u32 4294901760, %v4571_v18  ;;  %v5034_v18 = vld [vmem:[#allocation5_spill] sm:$0xff]  ;;  %v5035_v11 = vld [vmem:[#allocation6_spill] sm:$0xff] }
  0x3f   :  { %v3959_v63 = vpack.c.bf16 %v5032_v3, %v5031_v58  ;;  %3912 = vmatpush3.bf16.msra.mxu1 %v4288_v20  ;;  %3890 = vmatprep.subr.bf16.mxu0 %v3889_v8  ;;  %v3895_v44 = vpack.c.bf16 %v4444_v30, %v4430_v5  ;;  %v3897_v17 = vpack.c.bf16 %v4463_v56, %v4448_v51  ;;  %v5036_v8 = vld [vmem:[#allocation10_spill] sm:$0xff]  ;;  %vm946_vm0 = vcmask 64512  }
  0x40   :  { %3914 = vmatprep.subr.bf16.mxu1 %v4292_v22  ;;  %651 = vmatprep.mubr.f32.mxu1 %v5033_v23  ;;  %v3899_v42 = vpack.c.bf16 %v4486_v61, %v4472_v0  ;;  %v3901_v50 = vpack.c.bf16 %v4505_v29, %v4490_v7  ;;  %v3903_v60 = vpack.c.bf16 %v4528_v53, %v4514_v54  ;;  %vm4195_vm1 = vmmov 0  }
  0x41   :  { %v3905_v5 = vpack.c.bf16 %v4544_v34, %v4532_v37  ;;  %v3907_v30 = vpack.c.bf16 %v4585_v2, %v4553_v41  ;;  %vm1463_vm2 = vcmask 130048  }
  0x42   :  { %3892 = vmatpush3.bf16.msra.mxu0 %v3891_v12 }
  0x43   :  { %3916 = vmatpush3.bf16.msra.mxu1 %v4305_v27  ;;  %3894 = vmatprep.subr.bf16.mxu0 %v3893_v10 }
  0x44   :  { %3918 = vmatprep.subr.bf16.mxu1 %v4322_v39 }
  0x46   :  { %3896 = vmatpush3.bf16.msra.mxu0 %v3895_v44 }
  0x47   :  { %3920 = vmatpush3.bf16.msra.mxu1 %v4333_v45  ;;  %3898 = vmatprep.subr.bf16.mxu0 %v3897_v17 }
  0x48   :  { %3922 = vmatprep.subr.bf16.mxu1 %v4361_v62 }
  0x4a   :  { %3900 = vmatpush3.bf16.msra.mxu0 %v3899_v42 }
  0x4b   :  { %3924 = vmatpush3.bf16.msra.mxu1 %v4386_v16  ;;  %3902 = vmatprep.subr.bf16.mxu0 %v3901_v50 }
  0x4c   :  { %3926 = vmatprep.subr.bf16.mxu1 %v4404_v49 }
  0x4e   :  { %3904 = vmatpush3.bf16.msra.mxu0 %v3903_v60 }
  0x4f   :  { %3928 = vmatpush3.bf16.msra.mxu1 %v4428_v4  ;;  %3906 = vmatprep.subr.bf16.mxu0 %v3905_v5 }
  0x50   :  { %3930 = vmatprep.subr.bf16.mxu1 %v4446_v48 }
  0x52   :  { %3908 = vmatpush3.bf16.msra.mxu0 %v3907_v30 }
  0x53   :  { %3932 = vmatpush3.bf16.msra.mxu1 %v5034_v18  ;;  %3942 = vmatprep.subr.bf16.mxu0 %v3941_v6  ;;  %v5041_v6 = vand.u32 4294901760, %v4463_v56 }
  0x54   :  { %3934 = vmatprep.subr.bf16.mxu1 %v5035_v11 }
  0x55   :  { %547 = vmatmul.mubr.f32.vlgmr.msra.gmra.mrb[2].mxu0 %v4581_v19  ;;  %v5042_v19 = vand.u32 4294901760, %v4472_v0 }
  0x56   :  { %3944 = vmatpush3.bf16.msra.mxu0 %v3943_v52  ;;  %821 = vmatprep.mubr.f32.mxu0 %v5036_v8 }
  0x57   :  { %3936 = vmatpush3.bf16.msra.mxu1 %v5037_v13  ;;  %3946 = vmatprep.subr.bf16.mxu0 %v3945_v33  ;;  %v5040_v33 = vand.u32 4294901760, %v4448_v51  ;;  %v5046_v51 = vand.u32 4294901760, %v4514_v54 }
  0x58   :  { %3938 = vmatprep.subr.bf16.mxu1 %v5038_v1 }
  0x5a   :  { %3948 = vmatpush3.bf16.msra.mxu0 %v3947_v47 }
  0x5b   :  { %3940 = vmatpush3.bf16.msra.mxu1 %v5039_v36  ;;  %3950 = vmatprep.subr.bf16.mxu0 %v3949_v55 }
  0x5c   :  { %3974 = vmatprep.subr.bf16.mxu1 %v4278_v14  ;;  %v3961_v14 = vpack.c.bf16 %v5041_v6, %v5040_v33  ;;  %v4194_v33 = vmov 0.0|0.0   ;;  %v4196_v6 = vmov 0.0  }
  0x5e   :  { %655 = vmatmul.mubr.f32.vlgmr.msra.gmra.mrb[2].mxu1 %v174_v35  ;;  %3952 = vmatpush3.bf16.msra.mxu0 %v3951_v9 }
  0x5f   :  { %3976 = vmatpush3.bf16.msra.mxu1 %v4288_v20  ;;  %3954 = vmatprep.subr.bf16.mxu0 %v3953_v59  ;;  %v5043_v20 = vand.u32 4294901760, %v4486_v61  ;;  %v5048_v61 = vand.u32 4294901760, %v4532_v37  ;;  %v934_v37 = vld [vmem:[%s4956_s5] sm:$0xff] }
  0x60   :  { %3978 = vmatprep.subr.bf16.mxu1 %v4292_v22  ;;  %925 = vmatprep.mubr.f32.mxu1 %v5036_v8  ;;  %v5044_v22 = vand.u32 4294901760, %v4490_v7  ;;  %v5050_v7 = vand.u32 4294901760, %v4553_v41  ;;  %v932_v41 = vld [vmem:[%s4955_s4] sm:$0xff] }
  0x61   :  { %v3963_v35 = vpack.c.bf16 %v5043_v20, %v5042_v19 }
  0x62   :  { %3956 = vmatpush3.bf16.msra.mxu0 %v3955_v40 }
  0x63   :  { %3980 = vmatpush3.bf16.msra.mxu1 %v4305_v27  ;;  %3958 = vmatprep.subr.bf16.mxu0 %v3957_v46  ;;  %v5045_v27 = vand.u32 4294901760, %v4505_v29  ;;  %v933_v46 = vld [vmem:[%s4955_s4 + $0x8] sm:$0xff] }
  0x64   :  { %3982 = vmatprep.subr.bf16.mxu1 %v4322_v39  ;;  %v5047_v39 = vand.u32 4294901760, %v4528_v53  ;;  %v948_v53 = vsel %vm946_vm0, %v932_v41, 0  ;;  %v951_v58 = vsel %vm946_vm0, %v933_v46, 0  ;;  %v1932_v46 = vld [vmem:[%s4959_s8] sm:$0xff] }
  0x65   :  { %v3965_v52 = vpack.c.bf16 %v5045_v27, %v5044_v22  ;;  %v4758_v54 = vand.u32 4294901760, %v948_v53  ;;  %v1029_v3 = vand.u32 4294901760, %v951_v58 }
  0x66   :  { %3960 = vmatpush3.bf16.msra.mxu0 %v3959_v63  ;;  %v3967_v56 = vpack.c.bf16 %v5047_v39, %v5046_v51 }
  0x67   :  { %3984 = vmatpush3.bf16.msra.mxu1 %v4333_v45  ;;  %3962 = vmatprep.subr.bf16.mxu0 %v3961_v14  ;;  %v5049_v45 = vand.u32 4294901760, %v4544_v34  ;;  %v4193_v34 = vmov 0   ;;  %v1030_v23 = vsub.f32 %v951_v58, %v1029_v3  ;;  %v1948_v58 = vsel %vm1463_vm2, %v1932_v46, 0 }
  0x68   :  { %3986 = vmatprep.subr.bf16.mxu1 %v4361_v62  ;;  %v5051_v62 = vand.u32 4294901760, %v4585_v2  ;;  %4149 = vset.pattern.permute.xlu0 %v4193_v34  ;;  %v1457_v2 = vld [vmem:[%s4958_s7] sm:$0xff] }
  0x69   :  { %v3969_v0 = vpack.c.bf16 %v5049_v45, %v5048_v61  ;;  %4150 = vset.pattern.permute.xlu1 %v4193_v34  ;;  %938 = vperm.xlu0 %4149, %v934_v37   ;;  %v1031_v17 = vand.u32 4294901760, %v1030_v23 }
  0x6a   :  { %3964 = vmatpush3.bf16.msra.mxu0 %v3963_v35  ;;  %v3971_v29 = vpack.c.bf16 %v5051_v62, %v5050_v7 }
  0x6b   :  { %3988 = vmatpush3.bf16.msra.mxu1 %v4386_v16  ;;  %3966 = vmatprep.subr.bf16.mxu0 %v3965_v52  ;;  %v4761_v16 = vsub.f32 %v948_v53, %v4758_v54  ;;  %v1032_v5 = vsub.f32 %v1030_v23, %v1031_v17 }
  0x6c   :  { %3990 = vmatprep.subr.bf16.mxu1 %v4404_v49 }
  0x6d   :  { %v1021_v49 = vand.u32 4294901760, %v4761_v16 }
  0x6e   :  { %3968 = vmatpush3.bf16.msra.mxu0 %v3967_v56 }
  0x6f   :  { %3992 = vmatpush3.bf16.msra.mxu1 %v4428_v4  ;;  %3970 = vmatprep.subr.bf16.mxu0 %v3969_v0  ;;  %v1022_v4 = vsub.f32 %v4761_v16, %v1021_v49  ;;  %v1456_v0 = vld [vmem:[%s4957_s6] sm:$0xff]  ;;  %s4197_s6 = smov 112  }
  0x70   :  { %3994 = vmatprep.subr.bf16.mxu1 %v4446_v48  ;;  %v1465_v41 = vsel %vm1463_vm2, %v1456_v0, 0 }
  0x71   :  { %v1023_v48 = vand.u32 4294901760, %v1022_v4 }
  0x72   :  { %3972 = vmatpush3.bf16.msra.mxu0 %v3971_v29 }
  0x73   :  { %3996 = vmatpush3.bf16.msra.mxu1 %v5034_v18 }
  0x74   :  { %3998 = vmatprep.subr.bf16.mxu1 %v5035_v11  ;;  %v1033_v11 = vand.u32 4294901760, %v1032_v5 }
  0x75   :  { %823 = vmatmul.mubr.f32.vlgmr.msra.gmra.mrb[4].mxu0 %v4568_v57 }
  0x76   :  { %3716 = vmatprep.mubr.f32.mxu0 %v1021_v49 }
  0x77   :  { %4000 = vmatpush3.bf16.msra.mxu1 %v5037_v13 }
  0x78   :  { %4002 = vmatprep.subr.bf16.mxu1 %v5038_v1 }
  0x7b   :  { %4004 = vmatpush3.bf16.msra.mxu1 %v5039_v36 }
  0x7e   :  { %927 = vmatmul.mubr.f32.vlgmr.msra.gmra.mrb[4].mxu1 %v4568_v57  ;;  %v935_v57 = vld [vmem:[%s4956_s5 + $0x8] sm:$0xff] }
  0x7f   :  { %3701 = vmatprep.mubr.f32.mxu1 %v1023_v48  ;;  %943 = vperm.xlu0 %4149, %v935_v57  }
  0x83   :  { %1460 = vperm.xlu0 %4149, %v1457_v2  }
  0xe8   :  { %v939_v14 = vpop.permute.xlu0 %938 }
  0xfe   :  { %v944_v19 = vpop.permute.xlu0 %943 }
 0x108   :  { %v3467_v47 = vpop.f32.mrb[0].mxu0 }
 0x109   :  { %v3468_v31 = vpop.f32.mrb[1].mxu0 }
 0x10a   :  { %v3469_v32 = vadd.f32 %v3468_v31, %v3467_v47 }
 0x111   :  { %v3502_v55 = vpop.f32.mrb[0].mxu1 }
 0x112   :  { %v3503_v15 = vpop.f32.mrb[1].mxu1 }
 0x113   :  { %v3504_v21 = vadd.f32 %v3503_v15, %v3502_v55 }
 0x115   :  { %v411_v9 = vadd.f32 %v3504_v21, %v3469_v32 }
 0x128   :  { %v3537_v25 = vpop.f32.mrb[2].mxu0 }
 0x129   :  { %v3538_v26 = vpop.f32.mrb[3].mxu0 }
 0x12a   :  { %v3539_v59 = vadd.f32 %v3538_v26, %v3537_v25 }
 0x12c   :  { %v549_v28 = vadd.f32 %v3539_v59, %v411_v9 }
 0x131   :  { %v3572_v38 = vpop.f32.mrb[2].mxu1 }
 0x132   :  { %v3573_v40 = vpop.f32.mrb[3].mxu1 }
 0x133   :  { %v3574_v43 = vadd.f32 %v3573_v40, %v3572_v38 }
 0x135   :  { %v657_v24 = vadd.f32 %v3574_v43, %v549_v28 }
 0x148   :  { %v3607_v63 = vpop.f32.mrb[4].mxu0 }
 0x149   :  { %v3608_v12 = vpop.f32.mrb[5].mxu0 }
 0x14a   :  { %v3609_v10 = vadd.f32 %v3608_v12, %v3607_v63 }
 0x14c   :  { %v825_v44 = vadd.f32 %v3609_v10, %v657_v24  ;;  %v1933_v24 = vld [vmem:[%s4960_s9] sm:$0xff] }
 0x151   :  { %v3642_v42 = vpop.f32.mrb[4].mxu1 }
 0x152   :  { %v3643_v50 = vpop.f32.mrb[5].mxu1 }
 0x153   :  { %v3644_v60 = vadd.f32 %v3643_v50, %v3642_v42 }
 0x155   :  { %v929_v30 = vadd.f32 %v3644_v60, %v825_v44 }
 0x157   :  { %v954_v18 = vand.u32 4294901760, %v929_v30 }
 0x159   :  { %v1041_v8 = vsub.f32 %v929_v30, %v954_v18  ;;  %3699 = vmatprep.subr.mxu1 %v954_v18  ;;  %3714 = vmatprep.subr.mxu0 %v954_v18 }
 0x15a   :  { %3700 = vmatpush3.msra.mxu1 %v954_v18  ;;  %3715 = vmatpush3.msra.mxu0 %v954_v18 }
 0x15b   :  { %3702 = vmatmul.mubr.f32.vlgmr.msra.gmra.mrb[6].mxu1 %v1033_v11  ;;  %3717 = vmatmul.mubr.f32.vlgmr.msra.gmra.mrb[6].mxu0 %v1031_v17  ;;  %v1042_v13 = vand.u32 4294901760, %v1041_v8 }
 0x15c   :  { %3706 = vmatprep.mubr.f32.mxu1 %v4758_v54  ;;  %3721 = vmatprep.mubr.f32.mxu0 %v4758_v54 }
 0x15d   :  { %3719 = vmatprep.subr.mxu0 %v1042_v13  ;;  %v1043_v1 = vsub.f32 %v1041_v8, %v1042_v13 }
 0x15e   :  { %3720 = vmatpush3.msra.mxu0 %v1042_v13 }
 0x15f   :  { %3724 = vmatprep.subr.mxu0 %v954_v18  ;;  %v1044_v36 = vand.u32 4294901760, %v1043_v1 }
 0x161   :  { %3704 = vmatprep.subr.mxu1 %v1044_v36 }
 0x162   :  { %3705 = vmatpush3.msra.mxu1 %v1044_v36 }
 0x163   :  { %3707 = vmatmul.mubr.f32.vlgmr.msra.gmra.mrb[6].mxu1 %v1029_v3  ;;  %3709 = vmatprep.subr.mxu1 %v1041_v8 }
 0x164   :  { %3722 = vmatmul.mubr.f32.vlgmr.msra.gmra.mrb[6].mxu0 %v1029_v3  ;;  %3710 = vmatpush3.msra.mxu1 %v1041_v8 }
 0x165   :  { %3725 = vmatpush3.msra.mxu0 %v954_v18  ;;  %3711 = vmatprep.mubr.f32.mxu1 %v4761_v16 }
 0x166   :  { %3726 = vmatprep.mubr.f32.mxu0 %v4758_v54  ;;  %4005 = vmatprep.subr.bf16.mxu1 %v4194_v33  ;;  %v1534_v54 = vand.u32 4294901760, %v1465_v41 }
 0x167   :  { %4023 = vmatprep.subr.bf16.mxu0 %v4194_v33 }
 0x168   :  { %v1535_v16 = vsub.f32 %v1465_v41, %v1534_v54 }
 0x16a   :  { %v1536_v49 = vand.u32 4294901760, %v1535_v16 }
 0x16b   :  { %3712 = vmatmul.mubr.f32.vlgmr.msra.gmra.mrb[6].mxu1 %v1030_v23 }
 0x16c   :  { %3727 = vmatmul.mubr.f32.vlgmr.msra.gmra.mrb[6].mxu0 %v1029_v3  ;;  %3733 = vmatprep.mubr.msk.f32.mxu1 %vm4195_vm1, %v4196_v6  ;;  %v1537_v2 = vsub.f32 %v1535_v16, %v1536_v49  ;;  %v2017_v3 = vand.u32 4294901760, %v1948_v58 }
 0x16d   :  { %3775 = vmatprep.mubr.msk.f32.mxu0 %vm4195_vm1, %v4196_v6 }
 0x16e   :  { %v1538_v21 = vand.u32 4294901760, %v1537_v2  ;;  %v2018_v63 = vsub.f32 %v1948_v58, %v2017_v3 }
 0x170   :  { %v2019_v10 = vand.u32 4294901760, %v2018_v63 }
 0x172   :  { %v2020_v42 = vsub.f32 %v2018_v63, %v2019_v10 }
 0x174   :  { %v2021_v18 = vand.u32 4294901760, %v2020_v42 }
 0x23e   :  { %v3713_v20 = vpop.f32.mrb[6].mxu1 }
 0x23f   :  { %v4089_v35 = vadd.f32 %v3713_v20, %v944_v19  ;;  %v3728_v22 = vpop.f32.mrb[6].mxu0  ;;  %v1191_v27 = vpop.f32.mrb[7].mxu1  ;;  %v2416_v20 = vld [vmem:[%s4953_s2 + $0x8] sm:$0xff] }
 0x240   :  { %v4091_v52 = vadd.f32 %v1191_v27, %v939_v14  ;;  %v1432_v51 = vpop.f32.mrb[7].mxu0 }
 0x241   :  { %v4090_v39 = vadd.f32 %v4089_v35, %v3728_v22  ;;  %v2418_v35 = vld [vmem:[%s4953_s2 + $0x18] sm:$0xff]  ;;  %v2415_v22 = vld [vmem:[%s4953_s2] sm:$0xff] }
 0x242   :  { %v4092_v56 = vadd.f32 %v4091_v52, %v1432_v51  ;;  %v2422_v52 = vand.u32 4294901760, %v2416_v20  ;;  %v2426_v51 = vand.u32 4294901760, %v2418_v35 }
 0x243   :  { %v3432_v61 = vmul.f32 -1.442695, %v4090_v39 }
 0x244   :  { %v3431_v45 = vmul.f32 -1.442695, %v4092_v56  ;;  %v4854_v41 = vsub.f32 %v2418_v35, %v2426_v51 }
 0x245   :  { %4151 = vpow2.f32 %v3432_v61 }
 0x246   :  { %4153 = vpow2.f32 %v3431_v45  ;;  %v4839_v45 = vpack.c.bf16 %v2426_v51, %v2422_v52 }
 0x24f   :  { %v4152_v7 = vpop.eup %4151 }
 0x250   :  { %v4154_v62 = vpop.eup %4153  ;;  %v1449_v29 = vadd.f32 1.0, %v4152_v7 }
 0x251   :  { %v1448_v53 = vadd.f32 1.0, %v4154_v62 }
 0x252   :  { %4155 = vrcp.f32 %v1449_v29  ;;  %v4852_v29 = vsub.f32 %v2416_v20, %v2422_v52 }
 0x253   :  { %4157 = vrcp.f32 %v1448_v53  ;;  %v2516_v53 = vand.u32 4294901760, %v4854_v41 }
 0x25c   :  { %v4156_v4 = vpop.eup %4155 }
 0x25d   :  { %v4158_v48 = vpop.eup %4157  ;;  %v1455_v37 = vmul.f32 %v4156_v4, %v4090_v39  ;;  %v2417_v39 = vld [vmem:[%s4953_s2 + $0x10] sm:$0xff]  ;;  %v2517_v4 = vsub.f32 %v4854_v41, %v2516_v53 }
 0x25e   :  { %v1454_v34 = vmul.f32 %v4158_v48, %v4092_v56  ;;  %v2424_v56 = vand.u32 4294901760, %v2415_v22  ;;  %v2428_v61 = vand.u32 4294901760, %v2417_v39 }
 0x25f   :  { %v1471_v57 = vand.u32 4294901760, %v1455_v37 }
 0x260   :  { %v1468_v47 = vand.u32 4294901760, %v1454_v34  ;;  %1941 = vrot.lane.b32.xlu1 %v1454_v34, %s4197_s6  ;;  %v4842_v0 = vpack.c.bf16 %v2428_v61, %v2424_v56  ;;  %v4844_v7 = vsub.f32 %v2415_v22, %v2424_v56  ;;  %v4846_v62 = vsub.f32 %v2417_v39, %v2428_v61 }
 0x261   :  { %v1553_v31 = vsub.f32 %v1455_v37, %v1471_v57 }
 0x262   :  { %v1546_v32 = vsub.f32 %v1454_v34, %v1468_v47  ;;  %v4006_v55 = vpack.c.bf16 %v1471_v57, %v1468_v47  ;;  %v2518_v57 = vand.u32 4294901760, %v2517_v4 }
 0x263   :  { %v1554_v15 = vand.u32 4294901760, %v1553_v31 }
 0x264   :  { %v1547_v9 = vand.u32 4294901760, %v1546_v32  ;;  %1943 = vrot.lane.b32.xlu1 %v1455_v37, %s4197_s6  ;;  %4007 = vmatpush3.bf16.msra.mxu1 %v4006_v55  ;;  %v4012_v25 = vpack.c.bf16 %v1553_v31, %v1546_v32 }
 0x265   :  { %4008 = vmatprep.subr.bf16.mxu1 %v4194_v33  ;;  %v1555_v26 = vsub.f32 %v1553_v31, %v1554_v15 }
 0x266   :  { %v1548_v59 = vsub.f32 %v1546_v32, %v1547_v9  ;;  %v4018_v28 = vpack.c.bf16 %v1554_v15, %v1547_v9  ;;  %v4051_v15 = vpack.c.bf16 %v4846_v62, %v4844_v7 }
 0x267   :  { %3734 = vmatmul.mubr.f32.vlgmr.msra.gmra.mrb[8].mxu1 %v1538_v21  ;;  %v1556_v38 = vand.u32 4294901760, %v1555_v26 }
 0x268   :  { %v1549_v40 = vand.u32 4294901760, %v1548_v59  ;;  %3740 = vmatprep.mubr.msk.f32.mxu1 %vm4195_vm1, %v4196_v6  ;;  %1936 = vperm.xlu1 %4150, %v1933_v24   ;;  %v2913_v24 = vld [vmem:[%s4954_s3] sm:$0xff] }
 0x26a   :  { %v4009_v43 = vpack.c.bf16 %v1556_v38, %v1549_v40  ;;  %v2914_v40 = vld [vmem:[%s4954_s3 + $0x8] sm:$0xff] }
 0x26b   :  { %v2920_v46 = vand.u32 4294901760, %v2914_v40 }
 0x26c   :  { %4010 = vmatpush3.bf16.msra.mxu1 %v4009_v43  ;;  %v2916_v43 = vld [vmem:[%s4954_s3 + $0x18] sm:$0xff] }
 0x26d   :  { %4011 = vmatprep.subr.bf16.mxu1 %v4194_v33  ;;  %v2924_v58 = vand.u32 4294901760, %v2916_v43 }
 0x26f   :  { %3741 = vmatmul.mubr.f32.vlgmr.msra.gmra.mrb[8].mxu1 %v1534_v54 }
 0x270   :  { %4013 = vmatpush3.bf16.msra.mxu1 %v4012_v25  ;;  %3747 = vmatprep.mubr.msk.f32.mxu1 %vm4195_vm1, %v4196_v6  ;;  %v1461_v25 = vpop.permute.xlu0 %1460 }
 0x271   :  { %4014 = vmatprep.subr.bf16.mxu1 %v4194_v33 }
 0x277   :  { %3748 = vmatmul.mubr.f32.vlgmr.msra.gmra.mrb[8].mxu1 %v1535_v16  ;;  %v2522_v16 = vand.u32 4294901760, %v4846_v62 }
 0x278   :  { %4016 = vmatpush3.bf16.msra.mxu1 %v4006_v55  ;;  %3754 = vmatprep.mubr.msk.f32.mxu1 %vm4195_vm1, %v4196_v6 }
 0x279   :  { %4017 = vmatprep.subr.bf16.mxu1 %v4194_v33  ;;  %v2523_v37 = vsub.f32 %v4846_v62, %v2522_v16 }
 0x27b   :  { %v2524_v47 = vand.u32 4294901760, %v2523_v37 }
 0x27f   :  { %3755 = vmatmul.mubr.f32.vlgmr.msra.gmra.mrb[8].mxu1 %v1536_v49 }
 0x280   :  { %4019 = vmatpush3.bf16.msra.mxu1 %v4018_v28  ;;  %3761 = vmatprep.mubr.msk.f32.mxu1 %vm4195_vm1, %v4196_v6 }
 0x281   :  { %4020 = vmatprep.subr.bf16.mxu1 %v4194_v33 }
 0x287   :  { %3762 = vmatmul.mubr.f32.vlgmr.msra.gmra.mrb[8].mxu1 %v1534_v54 }
 0x288   :  { %4022 = vmatpush3.bf16.msra.mxu1 %v4006_v55  ;;  %3768 = vmatprep.mubr.msk.f32.mxu1 %vm4195_vm1, %v4196_v6  ;;  %v4049_v55 = vpack.c.bf16 %v4854_v41, %v4852_v29 }
 0x289   :  { %4042 = vmatprep.subr.bf16.mxu1 %v4839_v45 }
 0x28f   :  { %3769 = vmatmul.mubr.f32.vlgmr.msra.gmra.mrb[8].mxu1 %v1534_v54  ;;  %v2510_v54 = vand.u32 4294901760, %v4844_v7 }
 0x290   :  { %2490 = vmatprep.mubr.f32.mxu1 %v4196_v6  ;;  %4044 = vmatpush1.bf16.msra.mxu1 %v4842_v0 }
 0x291   :  { %v2511_v48 = vsub.f32 %v4844_v7, %v2510_v54  ;;  %v4871_v9 = vpack.c.bf16 %v2522_v16, %v2510_v54 }
 0x293   :  { %v2512_v2 = vand.u32 4294901760, %v2511_v48 }
 0x295   :  { %v4047_v32 = vpack.c.bf16 %v2524_v47, %v2512_v2 }
 0x2d2   :  { %v1942_v12 = vpop.permute.xlu1 %1941 }
 0x2d3   :  { %v1951_v23 = vand.u32 4294901760, %v1942_v12 }
 0x2d5   :  { %v2029_v44 = vsub.f32 %v1942_v12, %v1951_v23 }
 0x2d6   :  { %v1944_v17 = vpop.permute.xlu1 %1943 }
 0x2d7   :  { %v2030_v50 = vand.u32 4294901760, %v2029_v44  ;;  %v1954_v60 = vand.u32 4294901760, %v1944_v17 }
 0x2d9   :  { %v4024_v5 = vpack.c.bf16 %v1954_v60, %v1951_v23  ;;  %v2036_v30 = vsub.f32 %v1944_v17, %v1954_v60  ;;  %v2031_v11 = vsub.f32 %v2029_v44, %v2030_v50  ;;  %v4895_v60 = vsub.f32 %v2914_v40, %v2920_v46  ;;  %v4168_v40 = vld [vmem:[%s4951_s0 + $0x8] sm:$0xff] }
 0x2db   :  { %v2037_v8 = vand.u32 4294901760, %v2036_v30  ;;  %4025 = vmatpush3.bf16.msra.mxu0 %v4024_v5  ;;  %v2032_v1 = vand.u32 4294901760, %v2031_v11  ;;  %v4030_v19 = vpack.c.bf16 %v2036_v30, %v2029_v44  ;;  %v3002_v11 = vand.u32 4294901760, %v4895_v60 }
 0x2dc   :  { %4026 = vmatprep.subr.bf16.mxu0 %v4194_v33 }
 0x2dd   :  { %v2038_v13 = vsub.f32 %v2036_v30, %v2037_v8  ;;  %v4036_v27 = vpack.c.bf16 %v2037_v8, %v2030_v50 }
 0x2de   :  { %3776 = vmatmul.mubr.f32.vlgmr.msra.gmra.mrb[8].mxu0 %v2021_v18 }
 0x2df   :  { %v2039_v36 = vand.u32 4294901760, %v2038_v13  ;;  %3782 = vmatprep.mubr.msk.f32.mxu0 %vm4195_vm1, %v4196_v6 }
 0x2e1   :  { %v4027_v14 = vpack.c.bf16 %v2039_v36, %v2032_v1 }
 0x2e3   :  { %4028 = vmatpush3.bf16.msra.mxu0 %v4027_v14  ;;  %v3003_v14 = vsub.f32 %v4895_v60, %v3002_v11 }
 0x2e4   :  { %4029 = vmatprep.subr.bf16.mxu0 %v4194_v33 }
 0x2e6   :  { %3783 = vmatmul.mubr.f32.vlgmr.msra.gmra.mrb[8].mxu0 %v2017_v3 }
 0x2e7   :  { %4031 = vmatpush3.bf16.msra.mxu0 %v4030_v19  ;;  %3789 = vmatprep.mubr.msk.f32.mxu0 %vm4195_vm1, %v4196_v6  ;;  %v1937_v16 = vpop.permute.xlu1 %1936 }
 0x2e8   :  { %4032 = vmatprep.subr.bf16.mxu0 %v4194_v33 }
 0x2ee   :  { %3790 = vmatmul.mubr.f32.vlgmr.msra.gmra.mrb[8].mxu0 %v2018_v63  ;;  %v2922_v63 = vand.u32 4294901760, %v2913_v24 }
 0x2ef   :  { %4034 = vmatpush3.bf16.msra.mxu0 %v4024_v5  ;;  %3796 = vmatprep.mubr.msk.f32.mxu0 %vm4195_vm1, %v4196_v6 }
 0x2f0   :  { %4035 = vmatprep.subr.bf16.mxu0 %v4194_v33  ;;  %v4887_v23 = vsub.f32 %v2913_v24, %v2922_v63 }
 0x2f2   :  { %v3008_v1 = vand.u32 4294901760, %v4887_v23 }
 0x2f4   :  { %v3009_v35 = vsub.f32 %v4887_v23, %v3008_v1 }
 0x2f6   :  { %3797 = vmatmul.mubr.f32.vlgmr.msra.gmra.mrb[8].mxu0 %v2019_v10  ;;  %v4885_v10 = vpack.c.bf16 %v2924_v58, %v2920_v46  ;;  %v3010_v39 = vand.u32 4294901760, %v3009_v35 }
 0x2f7   :  { %4037 = vmatpush3.bf16.msra.mxu0 %v4036_v27  ;;  %3803 = vmatprep.mubr.msk.f32.mxu0 %vm4195_vm1, %v4196_v6  ;;  %v3004_v27 = vand.u32 4294901760, %v3003_v14 }
 0x2f8   :  { %4038 = vmatprep.subr.bf16.mxu0 %v4194_v33  ;;  %v2504_v33 = vand.u32 4294901760, %v4852_v29 }
 0x2fa   :  { %v2505_v49 = vsub.f32 %v4852_v29, %v2504_v33  ;;  %v4869_v21 = vpack.c.bf16 %v2516_v53, %v2504_v33 }
 0x2fc   :  { %v2506_v34 = vand.u32 4294901760, %v2505_v49 }
 0x2fe   :  { %3804 = vmatmul.mubr.f32.vlgmr.msra.gmra.mrb[8].mxu0 %v2017_v3  ;;  %v4045_v31 = vpack.c.bf16 %v2518_v57, %v2506_v34 }
 0x2ff   :  { %4040 = vmatpush3.bf16.msra.mxu0 %v4024_v5  ;;  %3810 = vmatprep.mubr.msk.f32.mxu0 %vm4195_vm1, %v4196_v6  ;;  %v4897_v5 = vsub.f32 %v2916_v43, %v2924_v58 }
 0x300   :  { %4046 = vmatprep.subr.bf16.mxu1 %v4045_v31  ;;  %4066 = vmatprep.subr.bf16.mxu0 %v4885_v10 }
 0x301   :  { %v3014_v8 = vand.u32 4294901760, %v4897_v5  ;;  %v4073_v41 = vpack.c.bf16 %v4897_v5, %v4895_v60 }
 0x303   :  { %v3015_v19 = vsub.f32 %v4897_v5, %v3014_v8  ;;  %v4081_v53 = vpack.c.bf16 %v3014_v8, %v3002_v11 }
 0x305   :  { %v3016_v52 = vand.u32 4294901760, %v3015_v19 }
 0x306   :  { %3811 = vmatmul.mubr.f32.vlgmr.msra.gmra.mrb[8].mxu0 %v2017_v3  ;;  %v2915_v3 = vld [vmem:[%s4954_s3 + $0x10] sm:$0xff]  ;;  %s4198_s3 = smov [#allocation2]  }
 0x307   :  { %2988 = vmatprep.mubr.f32.mxu0 %v4196_v6  ;;  %v2926_v12 = vand.u32 4294901760, %v2915_v3  ;;  %v4069_v61 = vpack.c.bf16 %v3016_v52, %v3004_v27  ;;  %s3423_s25 = sshll.u32 %s4198_s3, 4  ;;  %s3424_s25 = int_to_ptr.vmem [resolvable:$true] %s3423_s25 }
 0x308   :  { %s4169_s4 = scalar_lea.vmem %s3424_s25, 256  ;;  %p4174_p1 = scmp.lt.s32.totalorder %s3424_s25, %s3424_s25 }
 0x309   :  { %v4889_v44 = vpack.c.bf16 %v2926_v12, %v2922_v63  ;;  %v4891_v17 = vsub.f32 %v2915_v3, %v2926_v12  ;;  %p4170_p0 = scmp.ne.s32.totalorder %s3424_s25, %s4169_s4  ;;  %p4175_p2 = scmp.lt.s32.totalorder %s4169_s4, %s4169_s4 }
 0x30b   :  { %4068 = vmatpush1.bf16.msra.mxu0 %v4889_v44  ;;  %v3020_v36 = vand.u32 4294901760, %v4891_v17  ;;  %v4075_v33 = vpack.c.bf16 %v4891_v17, %v4887_v23  ;;  %p4176_p3 = por %p4175_p2, %p4174_p1 }
 0x30c   :  { %4070 = vmatprep.subr.bf16.mxu0 %v4069_v61 }
 0x30d   :  { %v3021_v22 = vsub.f32 %v4891_v17, %v3020_v36  ;;  %v4083_v54 = vpack.c.bf16 %v3020_v36, %v3008_v1  ;;  %p4177_p4 = pnand %p4176_p3, %p4170_p0 }
 0x30f   :  { %v3022_v56 = vand.u32 4294901760, %v3021_v22 }
 0x311   :  { %v4071_v62 = vpack.c.bf16 %v3022_v56, %v3010_v39 }
 0x362   :  { %v1922_v26 = vpop.f32.mrb[8].mxu1 }
 0x363   :  { %v4093_v59 = vadd.f32 %v1922_v26, %v1461_v25  ;;  %v3770_v28 = vpop.f32.mrb[9].mxu1 }
 0x364   :  { %v4167_v28 = vld [vmem:[%s4951_s0] sm:$0xff] }
 0x365   :  { %v3433_v38 = vmul.f32 -1.442695, %v4093_v59 }
 0x367   :  { %4159 = vpow2.f32 %v3433_v38 }
 0x371   :  { %v4160_v42 = vpop.eup %4159 }
 0x372   :  { %v1929_v50 = vadd.f32 1.0, %v4160_v42 }
 0x374   :  { %4161 = vrcp.f32 %v1929_v50 }
 0x37e   :  { %v4162_v30 = vpop.eup %4161 }
 0x37f   :  { %v2420_v18 = vsel %vm1463_vm2, %v4162_v30, 0 }
 0x380   :  { %v2491_v13 = vand.u32 4294901760, %v2420_v18 }
 0x382   :  { %v2492_v20 = vsub.f32 %v2420_v18, %v2491_v13 }
 0x384   :  { %v2493_v51 = vand.u32 4294901760, %v2492_v20 }
 0x386   :  { %v2494_v7 = vsub.f32 %v2492_v20, %v2493_v51 }
 0x388   :  { %v2495_v29 = vand.u32 4294901760, %v2494_v7 }
 0x38a   :  { %2496 = vmatmul.mubr.f32.vlgmr.msra.gmra.mrb[10].mxu1 %v2495_v29 }
 0x38b   :  { %4048 = vmatpush1.bf16.msra.mxu1 %v4047_v32  ;;  %2586 = vmatprep.mubr.f32.mxu1 %v4196_v6 }
 0x38c   :  { %4050 = vmatprep.subr.bf16.mxu1 %v4049_v55 }
 0x392   :  { %2588 = vmatmul.mubr.f32.vlgmr.msra.gmra.mrb[10].mxu1 %v2491_v13 }
 0x393   :  { %4052 = vmatpush1.bf16.msra.mxu1 %v4051_v15  ;;  %2666 = vmatprep.mubr.f32.mxu1 %v4196_v6 }
 0x394   :  { %4054 = vmatprep.subr.bf16.mxu1 %v4839_v45 }
 0x39a   :  { %2669 = vmatmul.mubr.f32.vlgmr.msra.gmra.mrb[10].mxu1 %v2492_v20 }
 0x39b   :  { %4056 = vmatpush1.bf16.msra.mxu1 %v4842_v0  ;;  %2743 = vmatprep.mubr.f32.mxu1 %v4196_v6 }
 0x39c   :  { %4058 = vmatprep.subr.bf16.mxu1 %v4869_v21 }
 0x3a2   :  { %2747 = vmatmul.mubr.f32.vlgmr.msra.gmra.mrb[10].mxu1 %v2493_v51 }
 0x3a3   :  { %4060 = vmatpush1.bf16.msra.mxu1 %v4871_v9  ;;  %2829 = vmatprep.mubr.f32.mxu1 %v4196_v6 }
 0x3a4   :  { %4062 = vmatprep.subr.bf16.mxu1 %v4839_v45 }
 0x3aa   :  { %2831 = vmatmul.mubr.f32.vlgmr.msra.gmra.mrb[10].mxu1 %v2491_v13 }
 0x3ab   :  { %4064 = vmatpush1.bf16.msra.mxu1 %v4842_v0  ;;  %2905 = vmatprep.mubr.f32.mxu1 %v4196_v6 }
 0x3b2   :  { %2907 = vmatmul.mubr.f32.vlgmr.msra.gmra.mrb[10].mxu1 %v2491_v13 }
 0x3d9   :  { %v2405_v49 = vpop.f32.mrb[8].mxu0 }
 0x3da   :  { %v4094_v4 = vadd.f32 %v2405_v49, %v1937_v16  ;;  %v3812_v48 = vpop.f32.mrb[9].mxu0 }
 0x3dc   :  { %v3434_v37 = vmul.f32 -1.442695, %v4094_v4 }
 0x3de   :  { %4163 = vpow2.f32 %v3434_v37 }
 0x3e8   :  { %v4164_v34 = vpop.eup %4163 }
 0x3e9   :  { %v2412_v57 = vadd.f32 1.0, %v4164_v34 }
 0x3eb   :  { %4165 = vrcp.f32 %v2412_v57 }
 0x3f5   :  { %v4166_v2 = vpop.eup %4165 }
 0x3f6   :  { %v2918_v47 = vsel %vm1463_vm2, %v4166_v2, 0 }
 0x3f7   :  { %v2989_v31 = vand.u32 4294901760, %v2918_v47 }
 0x3f9   :  { %v2990_v45 = vsub.f32 %v2918_v47, %v2989_v31 }
 0x3fb   :  { %v2991_v32 = vand.u32 4294901760, %v2990_v45 }
 0x3fd   :  { %v2992_v55 = vsub.f32 %v2990_v45, %v2991_v32 }
 0x3ff   :  { %v2993_v0 = vand.u32 4294901760, %v2992_v55 }
 0x401   :  { %2994 = vmatmul.mubr.f32.vlgmr.msra.gmra.mrb[10].mxu0 %v2993_v0 }
 0x402   :  { %4072 = vmatpush1.bf16.msra.mxu0 %v4071_v62  ;;  %3084 = vmatprep.mubr.f32.mxu0 %v4196_v6 }
 0x403   :  { %4074 = vmatprep.subr.bf16.mxu0 %v4073_v41 }
 0x409   :  { %3086 = vmatmul.mubr.f32.vlgmr.msra.gmra.mrb[10].mxu0 %v2989_v31 }
 0x40a   :  { %4076 = vmatpush1.bf16.msra.mxu0 %v4075_v33  ;;  %3164 = vmatprep.mubr.f32.mxu0 %v4196_v6 }
 0x40b   :  { %4078 = vmatprep.subr.bf16.mxu0 %v4885_v10 }
 0x411   :  { %3167 = vmatmul.mubr.f32.vlgmr.msra.gmra.mrb[10].mxu0 %v2990_v45 }
 0x412   :  { %4080 = vmatpush1.bf16.msra.mxu0 %v4889_v44  ;;  %3241 = vmatprep.mubr.f32.mxu0 %v4196_v6 }
 0x413   :  { %4082 = vmatprep.subr.bf16.mxu0 %v4081_v53 }
 0x419   :  { %3245 = vmatmul.mubr.f32.vlgmr.msra.gmra.mrb[10].mxu0 %v2991_v32 }
 0x41a   :  { %4084 = vmatpush1.bf16.msra.mxu0 %v4083_v54  ;;  %3327 = vmatprep.mubr.f32.mxu0 %v4196_v6 }
 0x41b   :  { %4086 = vmatprep.subr.bf16.mxu0 %v4885_v10 }
 0x421   :  { %3329 = vmatmul.mubr.f32.vlgmr.msra.gmra.mrb[10].mxu0 %v2989_v31 }
 0x422   :  { %4088 = vmatpush1.bf16.msra.mxu0 %v4889_v44  ;;  %3403 = vmatprep.mubr.f32.mxu0 %v4196_v6 }
 0x429   :  { %3405 = vmatmul.mubr.f32.vlgmr.msra.gmra.mrb[10].mxu0 %v2989_v31 }
 0x485   :  { %v2908_v15 = vpop.f32.mrb[10].mxu1 }
 0x486   :  { %v2910_v21 = vpop.f32.mrb[11].mxu1 }
 0x4fc   :  { %v3406_v9 = vpop.f32.mrb[10].mxu0 }
 0x4fd   :  { %v3411_v25 = vmul.f32 %v3406_v9, %v2908_v15  ;;  %v3408_v26 = vpop.f32.mrb[11].mxu0 }
 0x4fe   :  { %v3412_v59 = vmul.f32 %v3408_v26, %v2910_v21 }
 0x4ff   :  { %v3413_v38 = vmul.f32 %v4167_v28, %v3411_v25 }
 0x500   :  { %v3414_v43 = vmul.f32 %v4168_v40, %v3412_v59 }
 0x501   :  { %3415 = vst [vmem:[#allocation2] sm:$0xff] %v3413_v38 }
 0x502   :  { %3416 = vst [vmem:[#allocation2 + $0x8] sm:$0xff] %v3414_v43 }
 0x503   :  { %4180 = shalt.err (!%p4177_p4)
}
 0x504   :  { %s4181_s29 = scalar_lea.hbm %s4961_s10, 256 }
 0x505   :  { %p4182_p5 = scmp.ne.s32.totalorder %s4961_s10, %s4181_s29  ;;  %p4185_p6 = scmp.lt.u32.totalorder %s4181_s29, %s4961_s10 }
 0x507   :  { %p4187_p7 = pnand %p4185_p6, %p4182_p5 }
 0x509   :  { %4190 = shalt.err (!%p4187_p7)
}
 0x50a   :  { %3426 = dma.vmem_to_hbm [thread:$0]  %s3424_s25, 256, %s4961_s10, [#allocation3]  }
 0x50b   :  { %4191 = dma.done.wait [#allocation3], 256  }
 0x50c   :  { %4192 = vsyncadd [#allocation3], 4294967040 }
 0x50d   :  { %3430 = vsyncpa [#allocation3], 1 }

</bundles_post_ra>
